<compile_context>
chip_gen: v7x
topology: tpu7x:2x2x1
jax: 0.10.0
libtpu: 0.0.40
codegen_flags: <defaults>
</compile_context>

<pallas_src>
import jax
import jax.numpy as jnp
from jax.experimental import pallas as pl
from jax.experimental.pallas import tpu as pltpu

INPUT_DIM = 8                       # (x, y, vx, vy, theta, vtheta, step_id, phi)
OUTPUT_DIM = 9                      # 9 action logits
L = 7                               # positional mapping order used by the MLP
SCALE = 1.0
H_DIM = 128
MAP_DIM = INPUT_DIM * (2 * L + 1)   # 8 * 15 = 120
PAD_DIM = 128                       # lane-aligned feature / output width
PI = 3.1415927410125732
NEG_SLOPE = 0.2


def positional_mapping(x, L=L, scale=SCALE):
    """Elementwise sin/cos feature expansion (matches PositionalMapping.forward).

    Runs as plain JAX *inside the same jit* as the kernel -> single XLA fusion.
    """
    x = x * scale
    if L == 0:
        return x
    feats = [x]
    for i in range(L):
        feats.append(jnp.sin((2.0 ** i) * PI * x))
        feats.append(jnp.cos((2.0 ** i) * PI * x))
    return jnp.concatenate(feats, axis=-1) / scale


def mlp_kernel(xm_ref, w_ref, b_ref, o_ref):
    """4-layer MLP with LeakyReLU(0.2); fully VMEM-resident, lane-dense tiles.

    xm_ref: (BM, 128)  padded mapped features (cols 120..127 are zero)
    w_ref : (4, 128, 128) packed weight slab (W1 rows 120..127 zero,
                                              W4 cols 9..127 zero)
    b_ref : (4, 128)   packed bias slab (b4 entries 9..127 zero)
    o_ref : (BM, 128)  padded logits (cols 9..127 are exactly zero)
    """
    def lrelu(v):
        return jnp.maximum(v, NEG_SLOPE * v)

    h = xm_ref[...]                                                    # (BM, 128)
    h = lrelu(jnp.dot(h, w_ref[0],
                      preferred_element_type=jnp.float32) + b_ref[0:1, :])
    h = lrelu(jnp.dot(h, w_ref[1],
                      preferred_element_type=jnp.float32) + b_ref[1:2, :])
    h = lrelu(jnp.dot(h, w_ref[2],
                      preferred_element_type=jnp.float32) + b_ref[2:3, :])
    o_ref[...] = jnp.dot(h, w_ref[3],
                         preferred_element_type=jnp.float32) + b_ref[3:4, :]


@jax.jit
def mlp_forward_pallas(x, w_slab, b_slab):
    """x: (input_dim,) or (B, input_dim). Returns (B, OUTPUT_DIM) float32."""
    x = x.reshape(-1, INPUT_DIM)
    B = x.shape[0]

    # Pad the batch to a sublane-aligned size; block it for large batches so
    # the "parallel" grid axis can be sharded across TensorCores (v7x).
    if B <= PAD_DIM:
        Bp = max(8, pl.cdiv(B, 8) * 8)
        BM = Bp
    else:
        Bp = pl.cdiv(B, PAD_DIM) * PAD_DIM
        BM = PAD_DIM

    x_p = jnp.pad(x, ((0, Bp - B), (0, 0)))                     # (Bp, 8)
    xm = positional_mapping(x_p)                                # (Bp, 120)
    xm = jnp.pad(xm, ((0, 0), (0, PAD_DIM - MAP_DIM)))          # (Bp, 128)

    out = pl.pallas_call(
        mlp_kernel,
        out_shape=jax.ShapeDtypeStruct((Bp, PAD_DIM), jnp.float32),
        grid_spec=pltpu.PrefetchScalarGridSpec(
            num_scalar_prefetch=0,
            grid=(Bp // BM,),
            in_specs=[
                pl.BlockSpec((BM, PAD_DIM), lambda i: (i, 0)),          # xm
                pl.BlockSpec((4, PAD_DIM, PAD_DIM), lambda i: (0, 0, 0)),  # W slab
                pl.BlockSpec((4, PAD_DIM), lambda i: (0, 0)),           # b slab
            ],
            out_specs=pl.BlockSpec((BM, PAD_DIM), lambda i: (i, 0)),
        ),
        compiler_params=pltpu.CompilerParams(
            dimension_semantics=("parallel",)),
    )(xm, w_slab, b_slab)

    return out[:B, :OUTPUT_DIM]


def mlp_forward_ref(x, w_slab, b_slab):
    """Pure-JAX reference mirroring the PyTorch forward (uses unpadded slices)."""
    x = x.reshape(-1, INPUT_DIM)
    h = positional_mapping(x)

    def lrelu(v):
        return jnp.maximum(v, NEG_SLOPE * v)

    h = lrelu(h @ w_slab[0, :MAP_DIM, :H_DIM] + b_slab[0, :H_DIM])
    h = lrelu(h @ w_slab[1, :H_DIM, :H_DIM] + b_slab[1, :H_DIM])
    h = lrelu(h @ w_slab[2, :H_DIM, :H_DIM] + b_slab[2, :H_DIM])
    return h @ w_slab[3, :H_DIM, :OUTPUT_DIM] + b_slab[3, :OUTPUT_DIM]


def init_params(key):
    """nn.Linear-style init (uniform +-1/sqrt(fan_in)), packed into padded slabs.

    w_slab: (4, 128, 128) -- layer l weights at [l, :fan_in, :fan_out], zero pad.
    b_slab: (4, 128)      -- layer l bias at [l, :fan_out], zero pad.
    """
    dims = [(MAP_DIM, H_DIM), (H_DIM, H_DIM), (H_DIM, H_DIM), (H_DIM, OUTPUT_DIM)]
    w_slab = jnp.zeros((4, PAD_DIM, PAD_DIM), jnp.float32)
    b_slab = jnp.zeros((4, PAD_DIM), jnp.float32)
    for l, (fan_in, fan_out) in enumerate(dims):
        key, kw, kb = jax.random.split(key, 3)
        bound = 1.0 / (float(fan_in) ** 0.5)
        w = jax.random.uniform(kw, (fan_in, fan_out), jnp.float32, -bound, bound)
        b = jax.random.uniform(kb, (fan_out,), jnp.float32, -bound, bound)
        w_slab = w_slab.at[l, :fan_in, :fan_out].set(w)
        b_slab = b_slab.at[l, :fan_out].set(b)
    return w_slab, b_slab


if __name__ == "__main__":
    key = jax.random.PRNGKey(0)
    key, kx = jax.random.split(key)
    # Small batch of 4 eight-dim states (padded internally to 8 rows).
    x = jax.random.normal(kx, (4, INPUT_DIM), jnp.float32)
    w_slab, b_slab = init_params(key)

    out = mlp_forward_pallas(x, w_slab, b_slab)
    out = jax.block_until_ready(out)

    ref = mlp_forward_ref(x, w_slab, b_slab)
    assert out.shape == (4, OUTPUT_DIM), out.shape
    assert jnp.allclose(out, ref, atol=1e-4, rtol=1e-4), (out, ref)
    print("KERNEL_OK")
</pallas_src>

<mosaic_0001>
module attributes {stable_mosaic.version = 11 : i64} {
  func.func @mlp_kernel(%arg0: i32, %arg1: memref<8x128xf32, #tpu.memory_space<vmem>>, %arg2: memref<4x128x128xf32, #tpu.memory_space<vmem>>, %arg3: memref<4x128xf32, #tpu.memory_space<vmem>>, %arg4: memref<8x128xf32, #tpu.memory_space<vmem>>) attributes {dimension_semantics = [#tpu.dimension_semantics<parallel>], iteration_bounds = array<i64: 1>, scalar_prefetch = 0 : i64, scratch_operands = 0 : i64, tpu.core_type = #tpu.core_type<tc>, window_params = [{transform_indices = @transform_0, window_bounds = array<i64: 8, 128>}, {pipeline_mode = #tpu.pipeline_mode<synchronous>, transform_indices = @transform_1, window_bounds = array<i64: 4, 128, 128>}, {pipeline_mode = #tpu.pipeline_mode<synchronous>, transform_indices = @transform_2, window_bounds = array<i64: 4, 128>}, {transform_indices = @transform_3, window_bounds = array<i64: 8, 128>}]} {
    %c0 = arith.constant 0 : index
    %c0_0 = arith.constant 0 : index
    %0 = vector.load %arg1[%c0, %c0_0] : memref<8x128xf32, #tpu.memory_space<vmem>>, vector<8x128xf32>
    %c0_1 = arith.constant 0 : index
    %c0_2 = arith.constant 0 : index
    %c0_3 = arith.constant 0 : index
    %1 = vector.load %arg2[%c0_1, %c0_2, %c0_3] : memref<4x128x128xf32, #tpu.memory_space<vmem>>, vector<1x128x128xf32>
    %2 = vector.shape_cast %1 : vector<1x128x128xf32> to vector<128x128xf32>
    %cst = arith.constant dense<0.000000e+00> : vector<8x128xf32>
    %3 = tpu.matmul %0, %2, %cst {dimension_numbers = #tpu.dot_dimension_numbers<[1], [0], [0], [1], [0, 0, 1, 1], [], []>} : vector<8x128xf32>, vector<128x128xf32>, vector<8x128xf32> -> vector<8x128xf32>
    %c0_4 = arith.constant 0 : index
    %c0_5 = arith.constant 0 : index
    %4 = vector.load %arg3[%c0_4, %c0_5] : memref<4x128xf32, #tpu.memory_space<vmem>>, vector<1x128xf32>
    %5 = vector.broadcast %4 : vector<1x128xf32> to vector<8x128xf32>
    %6 = arith.addf %3, %5 : vector<8x128xf32>
    %cst_6 = arith.constant 2.000000e-01 : f32
    %7 = vector.broadcast %cst_6 : f32 to vector<8x128xf32>
    %8 = arith.mulf %7, %6 : vector<8x128xf32>
    %9 = arith.maximumf %6, %8 : vector<8x128xf32>
    %c1 = arith.constant 1 : index
    %c0_7 = arith.constant 0 : index
    %c0_8 = arith.constant 0 : index
    %10 = vector.load %arg2[%c1, %c0_7, %c0_8] : memref<4x128x128xf32, #tpu.memory_space<vmem>>, vector<1x128x128xf32>
    %11 = vector.shape_cast %10 : vector<1x128x128xf32> to vector<128x128xf32>
    %cst_9 = arith.constant dense<0.000000e+00> : vector<8x128xf32>
    %12 = tpu.matmul %9, %11, %cst_9 {dimension_numbers = #tpu.dot_dimension_numbers<[1], [0], [0], [1], [0, 0, 1, 1], [], []>} : vector<8x128xf32>, vector<128x128xf32>, vector<8x128xf32> -> vector<8x128xf32>
    %c1_10 = arith.constant 1 : index
    %c0_11 = arith.constant 0 : index
    %13 = vector.load %arg3[%c1_10, %c0_11] : memref<4x128xf32, #tpu.memory_space<vmem>>, vector<1x128xf32>
    %14 = vector.broadcast %13 : vector<1x128xf32> to vector<8x128xf32>
    %15 = arith.addf %12, %14 : vector<8x128xf32>
    %cst_12 = arith.constant 2.000000e-01 : f32
    %16 = vector.broadcast %cst_12 : f32 to vector<8x128xf32>
    %17 = arith.mulf %16, %15 : vector<8x128xf32>
    %18 = arith.maximumf %15, %17 : vector<8x128xf32>
    %c2 = arith.constant 2 : index
    %c0_13 = arith.constant 0 : index
    %c0_14 = arith.constant 0 : index
    %19 = vector.load %arg2[%c2, %c0_13, %c0_14] : memref<4x128x128xf32, #tpu.memory_space<vmem>>, vector<1x128x128xf32>
    %20 = vector.shape_cast %19 : vector<1x128x128xf32> to vector<128x128xf32>
    %cst_15 = arith.constant dense<0.000000e+00> : vector<8x128xf32>
    %21 = tpu.matmul %18, %20, %cst_15 {dimension_numbers = #tpu.dot_dimension_numbers<[1], [0], [0], [1], [0, 0, 1, 1], [], []>} : vector<8x128xf32>, vector<128x128xf32>, vector<8x128xf32> -> vector<8x128xf32>
    %c2_16 = arith.constant 2 : index
    %c0_17 = arith.constant 0 : index
    %22 = vector.load %arg3[%c2_16, %c0_17] : memref<4x128xf32, #tpu.memory_space<vmem>>, vector<1x128xf32>
    %23 = vector.broadcast %22 : vector<1x128xf32> to vector<8x128xf32>
    %24 = arith.addf %21, %23 : vector<8x128xf32>
    %cst_18 = arith.constant 2.000000e-01 : f32
    %25 = vector.broadcast %cst_18 : f32 to vector<8x128xf32>
    %26 = arith.mulf %25, %24 : vector<8x128xf32>
    %27 = arith.maximumf %24, %26 : vector<8x128xf32>
    %c3 = arith.constant 3 : index
    %c0_19 = arith.constant 0 : index
    %c0_20 = arith.constant 0 : index
    %28 = vector.load %arg2[%c3, %c0_19, %c0_20] : memref<4x128x128xf32, #tpu.memory_space<vmem>>, vector<1x128x128xf32>
    %29 = vector.shape_cast %28 : vector<1x128x128xf32> to vector<128x128xf32>
    %cst_21 = arith.constant dense<0.000000e+00> : vector<8x128xf32>
    %30 = tpu.matmul %27, %29, %cst_21 {dimension_numbers = #tpu.dot_dimension_numbers<[1], [0], [0], [1], [0, 0, 1, 1], [], []>} : vector<8x128xf32>, vector<128x128xf32>, vector<8x128xf32> -> vector<8x128xf32>
    %c3_22 = arith.constant 3 : index
    %c0_23 = arith.constant 0 : index
    %31 = vector.load %arg3[%c3_22, %c0_23] : memref<4x128xf32, #tpu.memory_space<vmem>>, vector<1x128xf32>
    %32 = vector.broadcast %31 : vector<1x128xf32> to vector<8x128xf32>
    %33 = arith.addf %30, %32 : vector<8x128xf32>
    %c0_24 = arith.constant 0 : index
    %c0_25 = arith.constant 0 : index
    %34 = vector.load %arg4[%c0_24, %c0_25] : memref<8x128xf32, #tpu.memory_space<vmem>>, vector<8x128xf32>
    tpu.vector_store %arg4[%c0_24, %c0_25], %33 {strides = array<i32>} : memref<8x128xf32, #tpu.memory_space<vmem>>, vector<8x128xf32>,
    return
  }
  func.func @transform_0(%arg0: i32) -> (i32, i32) {
    %c0_i32 = arith.constant 0 : i32
    %c0_i32_0 = arith.constant 0 : i32
    return %arg0, %c0_i32 : i32, i32
  }
  func.func @transform_1(%arg0: i32) -> (i32, i32, i32) {
    %c0_i32 = arith.constant 0 : i32
    %c0_i32_0 = arith.constant 0 : i32
    %c0_i32_1 = arith.constant 0 : i32
    %c0_i32_2 = arith.constant 0 : i32
    return %c0_i32, %c0_i32_0, %c0_i32_1 : i32, i32, i32
  }
  func.func @transform_2(%arg0: i32) -> (i32, i32) {
    %c0_i32 = arith.constant 0 : i32
    %c0_i32_0 = arith.constant 0 : i32
    %c0_i32_1 = arith.constant 0 : i32
    return %c0_i32, %c0_i32_0 : i32, i32
  }
  func.func @transform_3(%arg0: i32) -> (i32, i32) {
    %c0_i32 = arith.constant 0 : i32
    %c0_i32_0 = arith.constant 0 : i32
    return %arg0, %c0_i32 : i32, i32
  }
}

</mosaic_0001>

<bundles_post_ra>
// kernel: mlp_forward_pallas.1
= control target key start
LH: loop header
LB: loop body
LE: loop exit
PB: predicated region body
PF: predicated region fallthrough
CT: control target
= control target key end

     0   :  { %8 = vsyncpa [#allocation3], 0  ;;  %s746_s12 = smov [#allocation2]   ;;  %s842_s0 = inlined_call_operand.vmem [shape: f32[8,128], index: 0, kind: input, shape index: {}]   ;;  %s843_s1 = inlined_call_operand.hbm [shape: f32[4,128,128], index: 1, kind: input, shape index: {}]   ;;  %s844_s2 = inlined_call_operand.vmem [shape: f32[4,128], index: 2, kind: input, shape index: {}]   ;;  %s845_s3 = inlined_call_operand.vmem [shape: f32[8,128], index: 3, kind: output, shape index: {}]  }
   0x1   :  { %s16_s13 = sshll.u32 %s746_s12, 4  ;;  %s722_s16 = scalar_lea.hbm %s843_s1, 8192  ;;  %s17_s13 = int_to_ptr.vmem [resolvable:$true] %s16_s13 }
   0x2   :  { %p723_p0 = scmp.ne.s32.totalorder %s843_s1, %s722_s16  ;;  %p726_p1 = scmp.lt.u32.totalorder %s722_s16, %s843_s1 }
   0x4   :  { %p728_p2 = pnand %p726_p1, %p723_p0 }
   0x6   :  { %731 = shalt.err (!%p728_p2)
}
   0x7   :  { %s732_s21 = scalar_lea.vmem %s17_s13, 8192  ;;  %p737_p4 = scmp.lt.s32.totalorder %s17_s13, %s17_s13 }
   0x8   :  { %p733_p3 = scmp.ne.s32.totalorder %s17_s13, %s732_s21  ;;  %p738_p5 = scmp.lt.s32.totalorder %s732_s21, %s732_s21 }
   0xa   :  { %p739_p6 = por %p738_p5, %p737_p4 }
   0xc   :  { %p740_p7 = pnand %p739_p6, %p733_p3 }
   0xe   :  { %743 = shalt.err (!%p740_p7)
}
   0xf   :  { %s747_s22 = smov 128   ;;  %s748_s23 = smov 8  }
  0x10   :  { %22 = dma.hbm_to_vmem [thread:$0]  %s843_s1, 8192, %s17_s13, [#allocation3], %s747_s22, %s747_s22, %s748_s23  }
  0x11   :  { %744 = dma.done.wait [#allocation3], 8192  }
  0x12   :  { %745 = vsyncadd [#allocation3], 4294959104  ;;  %v749_v0 = vmov 0.0|0.0   ;;  %vm750_vm0 = vmmov 0   ;;  %v751_v1 = vmov 0.0   ;;  %v29_v2 = vld [vmem:[#allocation2] sm:$0xff] }
  0x13   :  { %620 = vmatprep.subr.bf16.mxu0 %v749_v0  ;;  %512 = vmatprep.mubr.msk.f32.mxu0 %vm750_vm0, %v751_v1  ;;  %v30_v3 = vld [vmem:[#allocation2 + $0x8] sm:$0xff]  ;;  %v31_v4 = vld [vmem:[#allocation2 + $0x10] sm:$0xff]  ;;  %v32_v6 = vld [vmem:[#allocation2 + $0x18] sm:$0xff] }
  0x14   :  { %644 = vmatprep.subr.bf16.mxu1 %v749_v0  ;;  %547 = vmatprep.mubr.msk.f32.mxu1 %vm750_vm0, %v751_v1  ;;  %v621_v5 = vpack.c.bf16 %v30_v3, %v29_v2  ;;  %v624_v7 = vpack.c.bf16 %v32_v6, %v31_v4  ;;  %v33_v8 = vld [vmem:[#allocation2 + $0x20] sm:$0xff]  ;;  %v34_v9 = vld [vmem:[#allocation2 + $0x28] sm:$0xff]  ;;  %v125_v12 = vld [vmem:[#allocation2 + $0x90] sm:$0xff] }
  0x15   :  { %v123_v10 = vld [vmem:[#allocation2 + $0x80] sm:$0xff]  ;;  %v124_v11 = vld [vmem:[#allocation2 + $0x88] sm:$0xff]  ;;  %v126_v13 = vld [vmem:[#allocation2 + $0x98] sm:$0xff]  ;;  %v627_v14 = vpack.c.bf16 %v34_v9, %v33_v8 }
  0x16   :  { %622 = vmatpush3.bf16.msra.mxu0 %v621_v5  ;;  %v645_v15 = vpack.c.bf16 %v124_v11, %v123_v10  ;;  %v35_v16 = vld [vmem:[#allocation2 + $0x30] sm:$0xff]  ;;  %v36_v17 = vld [vmem:[#allocation2 + $0x38] sm:$0xff]  ;;  %v648_v18 = vpack.c.bf16 %v126_v13, %v125_v12  ;;  %v127_v19 = vld [vmem:[#allocation2 + $0xa0] sm:$0xff] }
  0x17   :  { %623 = vmatprep.subr.bf16.mxu0 %v749_v0  ;;  %v128_v20 = vld [vmem:[#allocation2 + $0xa8] sm:$0xff]  ;;  %v630_v21 = vpack.c.bf16 %v36_v17, %v35_v16  ;;  %v37_v22 = vld [vmem:[#allocation2 + $0x40] sm:$0xff]  ;;  %v129_v25 = vld [vmem:[#allocation2 + $0xb0] sm:$0xff] }
  0x18   :  { %646 = vmatpush3.bf16.msra.mxu1 %v645_v15  ;;  %v38_v23 = vld [vmem:[#allocation2 + $0x48] sm:$0xff]  ;;  %v651_v24 = vpack.c.bf16 %v128_v20, %v127_v19  ;;  %v130_v26 = vld [vmem:[#allocation2 + $0xb8] sm:$0xff]  ;;  %v39_v28 = vld [vmem:[#allocation2 + $0x50] sm:$0xff] }
  0x19   :  { %647 = vmatprep.subr.bf16.mxu1 %v749_v0  ;;  %v633_v27 = vpack.c.bf16 %v38_v23, %v37_v22  ;;  %v40_v29 = vld [vmem:[#allocation2 + $0x58] sm:$0xff]  ;;  %v654_v30 = vpack.c.bf16 %v130_v26, %v129_v25  ;;  %v131_v31 = vld [vmem:[#allocation2 + $0xc0] sm:$0xff]  ;;  %v132_v32 = vld [vmem:[#allocation2 + $0xc8] sm:$0xff] }
  0x1a   :  { %625 = vmatpush3.bf16.msra.mxu0 %v624_v7  ;;  %v636_v33 = vpack.c.bf16 %v40_v29, %v39_v28  ;;  %v41_v34 = vld [vmem:[#allocation2 + $0x60] sm:$0xff]  ;;  %v42_v35 = vld [vmem:[#allocation2 + $0x68] sm:$0xff]  ;;  %v657_v36 = vpack.c.bf16 %v132_v32, %v131_v31  ;;  %v133_v37 = vld [vmem:[#allocation2 + $0xd0] sm:$0xff] }
  0x1b   :  { %626 = vmatprep.subr.bf16.mxu0 %v749_v0  ;;  %v134_v38 = vld [vmem:[#allocation2 + $0xd8] sm:$0xff]  ;;  %v639_v39 = vpack.c.bf16 %v42_v35, %v41_v34  ;;  %v43_v40 = vld [vmem:[#allocation2 + $0x70] sm:$0xff]  ;;  %v28_v44 = vld [vmem:[%s842_s0] sm:$0xff] }
  0x1c   :  { %649 = vmatpush3.bf16.msra.mxu1 %v648_v18  ;;  %v44_v41 = vld [vmem:[#allocation2 + $0x78] sm:$0xff]  ;;  %v660_v42 = vpack.c.bf16 %v134_v38, %v133_v37  ;;  %v135_v45 = vld [vmem:[#allocation2 + $0xe0] sm:$0xff]  ;;  %v136_v46 = vld [vmem:[#allocation2 + $0xe8] sm:$0xff] }
  0x1d   :  { %650 = vmatprep.subr.bf16.mxu1 %v749_v0  ;;  %v642_v43 = vpack.c.bf16 %v44_v41, %v43_v40  ;;  %v663_v47 = vpack.c.bf16 %v136_v46, %v135_v45  ;;  %v137_v48 = vld [vmem:[#allocation2 + $0xf0] sm:$0xff]  ;;  %v138_v49 = vld [vmem:[#allocation2 + $0xf8] sm:$0xff]  ;;  %v217_v51 = vld [vmem:[#allocation2 + $0x100] sm:$0xff] }
  0x1e   :  { %628 = vmatpush3.bf16.msra.mxu0 %v627_v14  ;;  %v666_v50 = vpack.c.bf16 %v138_v49, %v137_v48  ;;  %v218_v52 = vld [vmem:[#allocation2 + $0x108] sm:$0xff]  ;;  %v219_v53 = vld [vmem:[#allocation2 + $0x110] sm:$0xff]  ;;  %v220_v55 = vld [vmem:[#allocation2 + $0x118] sm:$0xff] }
  0x1f   :  { %629 = vmatprep.subr.bf16.mxu0 %v749_v0  ;;  %v669_v54 = vpack.c.bf16 %v218_v52, %v217_v51  ;;  %v672_v56 = vpack.c.bf16 %v220_v55, %v219_v53  ;;  %v221_v57 = vld [vmem:[#allocation2 + $0x120] sm:$0xff]  ;;  %v222_v58 = vld [vmem:[#allocation2 + $0x128] sm:$0xff]  ;;  %v223_v60 = vld [vmem:[#allocation2 + $0x130] sm:$0xff] }
  0x20   :  { %652 = vmatpush3.bf16.msra.mxu1 %v651_v24  ;;  %v675_v59 = vpack.c.bf16 %v222_v58, %v221_v57  ;;  %v224_v61 = vld [vmem:[#allocation2 + $0x138] sm:$0xff]  ;;  %v225_v63 = vld [vmem:[#allocation2 + $0x140] sm:$0xff]  ;;  %v226_v2 = vld [vmem:[#allocation2 + $0x148] sm:$0xff] }
  0x21   :  { %653 = vmatprep.subr.bf16.mxu1 %v749_v0  ;;  %v678_v62 = vpack.c.bf16 %v224_v61, %v223_v60  ;;  %v681_v3 = vpack.c.bf16 %v226_v2, %v225_v63  ;;  %v227_v4 = vld [vmem:[#allocation2 + $0x150] sm:$0xff]  ;;  %v228_v5 = vld [vmem:[#allocation2 + $0x158] sm:$0xff]  ;;  %v408_v7 = vld [vmem:[%s844_s2] ss:$0 sm:$0xff] }
  0x22   :  { %631 = vmatpush3.bf16.msra.mxu0 %v630_v21  ;;  %v684_v6 = vpack.c.bf16 %v228_v5, %v227_v4  ;;  %v229_v13 = vld [vmem:[#allocation2 + $0x160] sm:$0xff]  ;;  %v230_v14 = vld [vmem:[#allocation2 + $0x168] sm:$0xff]  ;;  %v231_v16 = vld [vmem:[#allocation2 + $0x170] sm:$0xff] }
  0x23   :  { %632 = vmatprep.subr.bf16.mxu0 %v749_v0  ;;  %v687_v15 = vpack.c.bf16 %v230_v14, %v229_v13  ;;  %v232_v17 = vld [vmem:[#allocation2 + $0x178] sm:$0xff]  ;;  %v311_v19 = vld [vmem:[#allocation2 + $0x180] sm:$0xff]  ;;  %v312_v20 = vld [vmem:[#allocation2 + $0x188] sm:$0xff] }
  0x24   :  { %655 = vmatpush3.bf16.msra.mxu1 %v654_v30  ;;  %v690_v18 = vpack.c.bf16 %v232_v17, %v231_v16  ;;  %v313_v21 = vld [vmem:[#allocation2 + $0x190] sm:$0xff]  ;;  %v693_v22 = vpack.c.bf16 %v312_v20, %v311_v19  ;;  %v314_v23 = vld [vmem:[#allocation2 + $0x198] sm:$0xff]  ;;  %v316_v25 = vld [vmem:[#allocation2 + $0x1a8] sm:$0xff] }
  0x25   :  { %656 = vmatprep.subr.bf16.mxu1 %v749_v0  ;;  %v696_v24 = vpack.c.bf16 %v314_v23, %v313_v21  ;;  %v318_v28 = vld [vmem:[#allocation2 + $0x1b8] sm:$0xff]  ;;  %v319_v30 = vld [vmem:[#allocation2 + $0x1c0] sm:$0xff]  ;;  %v320_v31 = vld [vmem:[#allocation2 + $0x1c8] sm:$0xff] }
  0x26   :  { %634 = vmatpush3.bf16.msra.mxu0 %v633_v27  ;;  %v317_v27 = vld [vmem:[#allocation2 + $0x1b0] sm:$0xff]  ;;  %v705_v32 = vpack.c.bf16 %v320_v31, %v319_v30  ;;  %v322_v34 = vld [vmem:[#allocation2 + $0x1d8] sm:$0xff]  ;;  %v410_v48 = vld [vmem:[%s844_s2 + $0x2] ss:$0 sm:$0xff] }
  0x27   :  { %635 = vmatprep.subr.bf16.mxu0 %v749_v0  ;;  %v702_v29 = vpack.c.bf16 %v318_v28, %v317_v27  ;;  %v325_v45 = vld [vmem:[#allocation2 + $0x1f0] sm:$0xff]  ;;  %v326_v46 = vld [vmem:[#allocation2 + $0x1f8] sm:$0xff] }
  0x28   :  { %658 = vmatpush3.bf16.msra.mxu1 %v657_v36  ;;  %v409_v36 = vld [vmem:[%s844_s2 + $0x1] ss:$0 sm:$0xff] }
  0x29   :  { %659 = vmatprep.subr.bf16.mxu1 %v749_v0 }
  0x2a   :  { %637 = vmatpush3.bf16.msra.mxu0 %v636_v33  ;;  %v321_v33 = vld [vmem:[#allocation2 + $0x1d0] sm:$0xff] }
  0x2b   :  { %638 = vmatprep.subr.bf16.mxu0 %v749_v0  ;;  %v708_v35 = vpack.c.bf16 %v322_v34, %v321_v33 }
  0x2c   :  { %661 = vmatpush3.bf16.msra.mxu1 %v660_v42  ;;  %v323_v42 = vld [vmem:[#allocation2 + $0x1e0] sm:$0xff] }
  0x2d   :  { %662 = vmatprep.subr.bf16.mxu1 %v749_v0 }
  0x2e   :  { %640 = vmatpush3.bf16.msra.mxu0 %v639_v39 }
  0x2f   :  { %641 = vmatprep.subr.bf16.mxu0 %v749_v0 }
  0x30   :  { %664 = vmatpush3.bf16.msra.mxu1 %v663_v47  ;;  %v714_v47 = vpack.c.bf16 %v326_v46, %v325_v45 }
  0x31   :  { %665 = vmatprep.subr.bf16.mxu1 %v749_v0 }
  0x32   :  { %643 = vmatpush3.bf16.msra.mxu0 %v642_v43  ;;  %v324_v43 = vld [vmem:[#allocation2 + $0x1e8] sm:$0xff] }
  0x33   :  { %668 = vmatprep.subr.bf16.mxu0 %v749_v0 }
  0x34   :  { %667 = vmatpush3.bf16.msra.mxu1 %v666_v50 }
  0x35   :  { %513 = vmatmul.mubr.f32.vlgmr.msra.gmra.mrb[0].mxu0 %v28_v44  ;;  %692 = vmatprep.subr.bf16.mxu1 %v749_v0  ;;  %v711_v44 = vpack.c.bf16 %v324_v43, %v323_v42 }
  0x36   :  { %582 = vmatprep.mubr.msk.f32.mxu0 %vm750_vm0, %v751_v1  ;;  %670 = vmatpush3.bf16.msra.mxu0 %v669_v54  ;;  %v411_v54 = vld [vmem:[%s844_s2 + $0x3] ss:$0 sm:$0xff] }
  0x37   :  { %671 = vmatprep.subr.bf16.mxu0 %v749_v0 }
  0x3a   :  { %673 = vmatpush3.bf16.msra.mxu0 %v672_v56 }
  0x3b   :  { %674 = vmatprep.subr.bf16.mxu0 %v749_v0 }
  0x3e   :  { %676 = vmatpush3.bf16.msra.mxu0 %v675_v59 }
  0x3f   :  { %677 = vmatprep.subr.bf16.mxu0 %v749_v0 }
  0x42   :  { %679 = vmatpush3.bf16.msra.mxu0 %v678_v62 }
  0x43   :  { %680 = vmatprep.subr.bf16.mxu0 %v749_v0 }
  0x46   :  { %682 = vmatpush3.bf16.msra.mxu0 %v681_v3 }
  0x47   :  { %683 = vmatprep.subr.bf16.mxu0 %v749_v0 }
  0x4a   :  { %685 = vmatpush3.bf16.msra.mxu0 %v684_v6 }
  0x4b   :  { %686 = vmatprep.subr.bf16.mxu0 %v749_v0 }
  0x4e   :  { %688 = vmatpush3.bf16.msra.mxu0 %v687_v15 }
  0x4f   :  { %689 = vmatprep.subr.bf16.mxu0 %v749_v0 }
  0x52   :  { %691 = vmatpush3.bf16.msra.mxu0 %v690_v18 }
 0x108   :  { %v116_v8 = vpop.f32.mrb[0].mxu0 }
 0x109   :  { %v117_v9 = vadd.f32 %v408_v7, %v116_v8  ;;  %v514_v10 = vpop.f32.mrb[1].mxu0 }
 0x10b   :  { %v120_v11 = vmul.f32 0.2, %v117_v9 }
 0x10d   :  { %v121_v12 = vmax.f32 %v117_v9, %v120_v11 }
 0x10f   :  { %548 = vmatmul.mubr.f32.vlgmr.msra.gmra.mrb[0].mxu1 %v121_v12 }
 0x110   :  { %617 = vmatprep.mubr.msk.f32.mxu1 %vm750_vm0, %v751_v1  ;;  %694 = vmatpush3.bf16.msra.mxu1 %v693_v22  ;;  %v315_v1 = vld [vmem:[#allocation2 + $0x1a0] sm:$0xff] }
 0x111   :  { %695 = vmatprep.subr.bf16.mxu1 %v749_v0  ;;  %v699_v26 = vpack.c.bf16 %v316_v25, %v315_v1 }
 0x114   :  { %697 = vmatpush3.bf16.msra.mxu1 %v696_v24 }
 0x115   :  { %698 = vmatprep.subr.bf16.mxu1 %v749_v0 }
 0x118   :  { %700 = vmatpush3.bf16.msra.mxu1 %v699_v26 }
 0x119   :  { %701 = vmatprep.subr.bf16.mxu1 %v749_v0 }
 0x11c   :  { %703 = vmatpush3.bf16.msra.mxu1 %v702_v29 }
 0x11d   :  { %704 = vmatprep.subr.bf16.mxu1 %v749_v0 }
 0x120   :  { %706 = vmatpush3.bf16.msra.mxu1 %v705_v32 }
 0x121   :  { %707 = vmatprep.subr.bf16.mxu1 %v749_v0 }
 0x124   :  { %709 = vmatpush3.bf16.msra.mxu1 %v708_v35 }
 0x125   :  { %710 = vmatprep.subr.bf16.mxu1 %v749_v0 }
 0x128   :  { %712 = vmatpush3.bf16.msra.mxu1 %v711_v44 }
 0x129   :  { %713 = vmatprep.subr.bf16.mxu1 %v749_v0 }
 0x12c   :  { %715 = vmatpush3.bf16.msra.mxu1 %v714_v47 }
 0x1e2   :  { %v210_v37 = vpop.f32.mrb[0].mxu1 }
 0x1e3   :  { %v211_v38 = vadd.f32 %v409_v36, %v210_v37  ;;  %v549_v39 = vpop.f32.mrb[1].mxu1 }
 0x1e5   :  { %v214_v40 = vmul.f32 0.2, %v211_v38 }
 0x1e7   :  { %v215_v41 = vmax.f32 %v211_v38, %v214_v40 }
 0x1e9   :  { %583 = vmatmul.mubr.f32.vlgmr.msra.gmra.mrb[2].mxu0 %v215_v41 }
 0x2bc   :  { %v304_v49 = vpop.f32.mrb[2].mxu0 }
 0x2bd   :  { %v305_v50 = vadd.f32 %v410_v48, %v304_v49  ;;  %v584_v51 = vpop.f32.mrb[3].mxu0 }
 0x2bf   :  { %v308_v52 = vmul.f32 0.2, %v305_v50 }
 0x2c1   :  { %v309_v53 = vmax.f32 %v305_v50, %v308_v52 }
 0x2c3   :  { %618 = vmatmul.mubr.f32.vlgmr.msra.gmra.mrb[2].mxu1 %v309_v53 }
 0x396   :  { %v398_v55 = vpop.f32.mrb[2].mxu1 }
 0x397   :  { %v399_v0 = vadd.f32 %v411_v54, %v398_v55  ;;  %v619_v56 = vpop.f32.mrb[3].mxu1 }
 0x399   :  { %402 = vst [vmem:[%s845_s3] sm:$0xff] %v399_v0 }
 0x39a   :  { %407 = vsyncpa [#allocation3], 1 }

</bundles_post_ra>
